<compile_context>
chip_gen: v7x
topology: tpu7x:2x2x1
jax: 0.10.0
libtpu: 0.0.40
codegen_flags: <defaults>
</compile_context>

<pallas_src>
import numpy as np
import jax
import jax.numpy as jnp
from jax import lax
from jax.experimental import pallas as pl
from jax.experimental.pallas import tpu as pltpu

BN_EPS = 1e-5


def _mlp_kernel(x_ref, w_ref, g_ref, b_ref, wout_ref, bout_ref, out_ref, x_sc):
    """One grid step == one hidden layer (Linear -> BatchNorm1d -> ReLU)."""
    i = pl.program_id(0)
    n_layers = pl.num_programs(0)

    # Load the network input into the resident activation scratch on step 0.
    @pl.when(i == 0)
    def _():
        x_sc[...] = x_ref[...]

    x = x_sc[...]                                   # (B, N) f32, vreg-resident
    w_t = w_ref[0]                                  # (N, N)  == linear weight, pre-transposed
    h = jnp.dot(x, w_t, preferred_element_type=jnp.float32)   # MXU, f32 acc

    # BatchNorm1d (training mode: batch mean / biased batch var) + affine + ReLU.
    mean = jnp.mean(h, axis=0, keepdims=True)       # (1, N)
    cen = h - mean
    var = jnp.mean(cen * cen, axis=0, keepdims=True)
    inv = lax.rsqrt(var + BN_EPS)
    hn = cen * inv * g_ref[0] + b_ref[0]            # (B, N), gamma/beta broadcast
    act = jnp.maximum(hn, 0.0)
    x_sc[...] = act                                 # carry to next layer

    # Final output projection (with bias) on the last layer only.
    @pl.when(i == n_layers - 1)
    def _():
        out_ref[...] = (jnp.dot(act, wout_ref[...],
                                preferred_element_type=jnp.float32)
                        + bout_ref[...])


def mlp_forward(x, weights, gammas, betas, w_out, b_out):
    """x: (B, N) f32; weights: (L, N, N); gammas/betas: (L, N);
    w_out: (D, N); b_out: (D,). Returns (B, D) f32."""
    B, N = x.shape
    L = weights.shape[0]
    D = w_out.shape[0]

    # Host-side layout plumbing (pure reshape/transpose, no compute hoisted).
    w_t_stack = jnp.transpose(weights, (0, 2, 1))   # so kernel does x @ W^T
    g_stack = gammas.reshape(L, 1, N)
    b_stack = betas.reshape(L, 1, N)
    wout_t = jnp.transpose(w_out)                   # (N, D)
    bout = b_out.reshape(1, D)

    grid_spec = pltpu.PrefetchScalarGridSpec(
        num_scalar_prefetch=0,
        grid=(L,),
        in_specs=[
            pl.BlockSpec((B, N), lambda i: (0, 0)),        # network input (resident)
            pl.BlockSpec((1, N, N), lambda i: (i, 0, 0)),  # layer i weight (pipelined)
            pl.BlockSpec((1, 1, N), lambda i: (i, 0, 0)),  # layer i gamma
            pl.BlockSpec((1, 1, N), lambda i: (i, 0, 0)),  # layer i beta
            pl.BlockSpec((N, D), lambda i: (0, 0)),        # output weight^T (resident)
            pl.BlockSpec((1, D), lambda i: (0, 0)),        # output bias (resident)
        ],
        out_specs=pl.BlockSpec((B, D), lambda i: (0, 0)),  # same block across grid
        scratch_shapes=[pltpu.VMEM((B, N), jnp.float32)],  # activation carry
    )

    return pl.pallas_call(
        _mlp_kernel,
        out_shape=jax.ShapeDtypeStruct((B, D), jnp.float32),
        grid_spec=grid_spec,
        compiler_params=pltpu.CompilerParams(
            dimension_semantics=("arbitrary",)),           # layers are sequential
    )(x, w_t_stack, g_stack, b_stack, wout_t, bout)


# ------------------------- plain-JAX reference -------------------------

def ref_forward(x, weights, gammas, betas, w_out, b_out):
    h = x
    for l in range(weights.shape[0]):
        h = jnp.dot(h, weights[l].T, precision=lax.Precision.HIGHEST)
        mean = jnp.mean(h, axis=0, keepdims=True)
        var = jnp.mean((h - mean) ** 2, axis=0, keepdims=True)
        h = (h - mean) / jnp.sqrt(var + BN_EPS)
        h = h * gammas[l][None, :] + betas[l][None, :]
        h = jnp.maximum(h, 0.0)
    return jnp.dot(h, w_out.T, precision=lax.Precision.HIGHEST) + b_out[None, :]


if __name__ == "__main__":
    key = jax.random.PRNGKey(0)

    # Small shapes consistent with the module: MLP(neural_num, dim, layers).
    B = 8            # batch
    N = 128          # neural_num (lane-dense hidden width)
    D = 32           # dim (final output)
    L = 8            # layers (module default is 100; grid handles any L)

    ks = jax.random.split(key, 6)
    # kaiming_normal-style init for the hidden linears (fan_in = N)
    weights = jax.random.normal(ks[0], (L, N, N), jnp.float32) * np.sqrt(2.0 / N)
    gammas = 1.0 + 0.1 * jax.random.normal(ks[1], (L, N), jnp.float32)
    betas = 0.1 * jax.random.normal(ks[2], (L, N), jnp.float32)
    w_out = jax.random.normal(ks[3], (D, N), jnp.float32) * np.sqrt(1.0 / N)
    b_out = 0.1 * jax.random.normal(ks[4], (D,), jnp.float32)
    x = jax.random.normal(ks[5], (B, N), jnp.float32)

    out = mlp_forward(x, weights, gammas, betas, w_out, b_out)
    out = jax.block_until_ready(out)

    ref = ref_forward(x, weights, gammas, betas, w_out, b_out)
    np.testing.assert_allclose(np.asarray(out), np.asarray(ref),
                               rtol=2e-2, atol=2e-2)

    print("KERNEL_OK")
</pallas_src>

<mosaic_0001>
module attributes {stable_mosaic.version = 11 : i64} {
  func.func @_mlp_kernel(%arg0: i32, %arg1: memref<8x128xf32, #tpu.memory_space<vmem>>, %arg2: memref<1x128x128xf32, #tpu.memory_space<vmem>>, %arg3: memref<1x1x128xf32, #tpu.memory_space<vmem>>, %arg4: memref<1x1x128xf32, #tpu.memory_space<vmem>>, %arg5: memref<128x32xf32, #tpu.memory_space<vmem>>, %arg6: memref<1x32xf32, #tpu.memory_space<vmem>>, %arg7: memref<8x32xf32, #tpu.memory_space<vmem>>, %arg8: memref<8x128xf32, #tpu.memory_space<vmem>>) attributes {dimension_semantics = [#tpu.dimension_semantics<arbitrary>], iteration_bounds = array<i64: 8>, scalar_prefetch = 0 : i64, scratch_operands = 1 : i64, tpu.core_type = #tpu.core_type<tc>, window_params = [{pipeline_mode = #tpu.pipeline_mode<synchronous>, transform_indices = @transform_0, window_bounds = array<i64: 8, 128>}, {transform_indices = @transform_1, window_bounds = array<i64: 1, 128, 128>}, {transform_indices = @transform_2, window_bounds = array<i64: 1, 1, 128>}, {transform_indices = @transform_3, window_bounds = array<i64: 1, 1, 128>}, {pipeline_mode = #tpu.pipeline_mode<synchronous>, transform_indices = @transform_4, window_bounds = array<i64: 128, 32>}, {pipeline_mode = #tpu.pipeline_mode<synchronous>, transform_indices = @transform_5, window_bounds = array<i64: 1, 32>}, {pipeline_mode = #tpu.pipeline_mode<synchronous>, transform_indices = @transform_6, window_bounds = array<i64: 8, 32>}]} {
    %c0_i32 = arith.constant 0 : i32
    %0 = arith.cmpi eq, %arg0, %c0_i32 : i32
    %1 = arith.extui %0 : i1 to i32
    %c0_i32_0 = arith.constant 0 : i32
    %2 = arith.cmpi ne, %1, %c0_i32_0 : i32
    scf.if %2 {
      %c0_20 = arith.constant 0 : index
      %c0_21 = arith.constant 0 : index
      %37 = vector.load %arg1[%c0_20, %c0_21] : memref<8x128xf32, #tpu.memory_space<vmem>>, vector<8x128xf32>
      %c0_22 = arith.constant 0 : index
      %c0_23 = arith.constant 0 : index
      %38 = vector.load %arg8[%c0_22, %c0_23] : memref<8x128xf32, #tpu.memory_space<vmem>>, vector<8x128xf32>
      tpu.vector_store %arg8[%c0_22, %c0_23], %37 {strides = array<i32>} : memref<8x128xf32, #tpu.memory_space<vmem>>, vector<8x128xf32>,
    } else {
    }
    %c0 = arith.constant 0 : index
    %c0_1 = arith.constant 0 : index
    %3 = vector.load %arg8[%c0, %c0_1] : memref<8x128xf32, #tpu.memory_space<vmem>>, vector<8x128xf32>
    %c0_2 = arith.constant 0 : index
    %c0_3 = arith.constant 0 : index
    %c0_4 = arith.constant 0 : index
    %4 = vector.load %arg2[%c0_2, %c0_3, %c0_4] : memref<1x128x128xf32, #tpu.memory_space<vmem>>, vector<1x128x128xf32>
    %5 = vector.shape_cast %4 : vector<1x128x128xf32> to vector<128x128xf32>
    %cst = arith.constant dense<0.000000e+00> : vector<8x128xf32>
    %6 = tpu.matmul %3, %5, %cst {dimension_numbers = #tpu.dot_dimension_numbers<[1], [0], [0], [1], [0, 0, 1, 1], [], []>} : vector<8x128xf32>, vector<128x128xf32>, vector<8x128xf32> -> vector<8x128xf32>
    %cst_5 = arith.constant dense<0.000000e+00> : vector<128xf32>
    %7 = vector.multi_reduction <add>, %6, %cst_5 [0] : vector<8x128xf32> to vector<128xf32>
    %8 = vector.shape_cast %7 : vector<128xf32> to vector<1x128xf32>
    %cst_6 = arith.constant 8.000000e+00 : f32
    %9 = vector.broadcast %cst_6 : f32 to vector<1x128xf32>
    %10 = arith.divf %8, %9 : vector<1x128xf32>
    %11 = vector.broadcast %10 : vector<1x128xf32> to vector<8x128xf32>
    %12 = arith.subf %6, %11 : vector<8x128xf32>
    %13 = arith.mulf %12, %12 : vector<8x128xf32>
    %cst_7 = arith.constant dense<0.000000e+00> : vector<128xf32>
    %14 = vector.multi_reduction <add>, %13, %cst_7 [0] : vector<8x128xf32> to vector<128xf32>
    %15 = vector.shape_cast %14 : vector<128xf32> to vector<1x128xf32>
    %cst_8 = arith.constant 8.000000e+00 : f32
    %16 = vector.broadcast %cst_8 : f32 to vector<1x128xf32>
    %17 = arith.divf %15, %16 : vector<1x128xf32>
    %cst_9 = arith.constant 9.99999974E-6 : f32
    %18 = vector.broadcast %cst_9 : f32 to vector<1x128xf32>
    %19 = arith.addf %17, %18 : vector<1x128xf32>
    %20 = math.rsqrt %19 : vector<1x128xf32>
    %21 = vector.broadcast %20 : vector<1x128xf32> to vector<8x128xf32>
    %22 = arith.mulf %12, %21 : vector<8x128xf32>
    %c0_10 = arith.constant 0 : index
    %c0_11 = arith.constant 0 : index
    %c0_12 = arith.constant 0 : index
    %23 = vector.load %arg3[%c0_10, %c0_11, %c0_12] : memref<1x1x128xf32, #tpu.memory_space<vmem>>, vector<1x1x128xf32>
    %24 = vector.shape_cast %23 : vector<1x1x128xf32> to vector<1x128xf32>
    %25 = vector.broadcast %24 : vector<1x128xf32> to vector<8x128xf32>
    %26 = arith.mulf %22, %25 : vector<8x128xf32>
    %c0_13 = arith.constant 0 : index
    %c0_14 = arith.constant 0 : index
    %c0_15 = arith.constant 0 : index
    %27 = vector.load %arg4[%c0_13, %c0_14, %c0_15] : memref<1x1x128xf32, #tpu.memory_space<vmem>>, vector<1x1x128xf32>
    %28 = vector.shape_cast %27 : vector<1x1x128xf32> to vector<1x128xf32>
    %29 = vector.broadcast %28 : vector<1x128xf32> to vector<8x128xf32>
    %30 = arith.addf %26, %29 : vector<8x128xf32>
    %cst_16 = arith.constant 0.000000e+00 : f32
    %31 = vector.broadcast %cst_16 : f32 to vector<8x128xf32>
    %32 = arith.maximumf %30, %31 : vector<8x128xf32>
    %c0_17 = arith.constant 0 : index
    %c0_18 = arith.constant 0 : index
    %33 = vector.load %arg8[%c0_17, %c0_18] : memref<8x128xf32, #tpu.memory_space<vmem>>, vector<8x128xf32>
    tpu.vector_store %arg8[%c0_17, %c0_18], %32 {strides = array<i32>} : memref<8x128xf32, #tpu.memory_space<vmem>>, vector<8x128xf32>,
    %c7_i32 = arith.constant 7 : i32
    %34 = arith.cmpi eq, %arg0, %c7_i32 : i32
    %35 = arith.extui %34 : i1 to i32
    %c0_i32_19 = arith.constant 0 : i32
    %36 = arith.cmpi ne, %35, %c0_i32_19 : i32
    scf.if %36 {
      %c0_20 = arith.constant 0 : index
      %c0_21 = arith.constant 0 : index
      %37 = vector.load %arg5[%c0_20, %c0_21] : memref<128x32xf32, #tpu.memory_space<vmem>>, vector<128x32xf32>
      %cst_22 = arith.constant dense<0.000000e+00> : vector<8x32xf32>
      %38 = tpu.matmul %32, %37, %cst_22 {dimension_numbers = #tpu.dot_dimension_numbers<[1], [0], [0], [1], [0, 0, 1, 1], [], []>} : vector<8x128xf32>, vector<128x32xf32>, vector<8x32xf32> -> vector<8x32xf32>
      %c0_23 = arith.constant 0 : index
      %c0_24 = arith.constant 0 : index
      %39 = vector.load %arg6[%c0_23, %c0_24] : memref<1x32xf32, #tpu.memory_space<vmem>>, vector<1x32xf32>
      %40 = vector.broadcast %39 : vector<1x32xf32> to vector<8x32xf32>
      %41 = arith.addf %38, %40 : vector<8x32xf32>
      %c0_25 = arith.constant 0 : index
      %c0_26 = arith.constant 0 : index
      %42 = vector.load %arg7[%c0_25, %c0_26] : memref<8x32xf32, #tpu.memory_space<vmem>>, vector<8x32xf32>
      tpu.vector_store %arg7[%c0_25, %c0_26], %41 {strides = array<i32>} : memref<8x32xf32, #tpu.memory_space<vmem>>, vector<8x32xf32>,
    } else {
    }
    return
  }
  func.func @transform_0(%arg0: i32) -> (i32, i32) {
    %c0_i32 = arith.constant 0 : i32
    %c0_i32_0 = arith.constant 0 : i32
    %c0_i32_1 = arith.constant 0 : i32
    return %c0_i32, %c0_i32_0 : i32, i32
  }
  func.func @transform_1(%arg0: i32) -> (i32, i32, i32) {
    %c0_i32 = arith.constant 0 : i32
    %c0_i32_0 = arith.constant 0 : i32
    %c0_i32_1 = arith.constant 0 : i32
    return %arg0, %c0_i32, %c0_i32_0 : i32, i32, i32
  }
  func.func @transform_2(%arg0: i32) -> (i32, i32, i32) {
    %c0_i32 = arith.constant 0 : i32
    %c0_i32_0 = arith.constant 0 : i32
    %c0_i32_1 = arith.constant 0 : i32
    return %arg0, %c0_i32, %c0_i32_0 : i32, i32, i32
  }
  func.func @transform_3(%arg0: i32) -> (i32, i32, i32) {
    %c0_i32 = arith.constant 0 : i32
    %c0_i32_0 = arith.constant 0 : i32
    %c0_i32_1 = arith.constant 0 : i32
    return %arg0, %c0_i32, %c0_i32_0 : i32, i32, i32
  }
  func.func @transform_4(%arg0: i32) -> (i32, i32) {
    %c0_i32 = arith.constant 0 : i32
    %c0_i32_0 = arith.constant 0 : i32
    %c0_i32_1 = arith.constant 0 : i32
    return %c0_i32, %c0_i32_0 : i32, i32
  }
  func.func @transform_5(%arg0: i32) -> (i32, i32) {
    %c0_i32 = arith.constant 0 : i32
    %c0_i32_0 = arith.constant 0 : i32
    %c0_i32_1 = arith.constant 0 : i32
    return %c0_i32, %c0_i32_0 : i32, i32
  }
  func.func @transform_6(%arg0: i32) -> (i32, i32) {
    %c0_i32 = arith.constant 0 : i32
    %c0_i32_0 = arith.constant 0 : i32
    %c0_i32_1 = arith.constant 0 : i32
    return %c0_i32, %c0_i32_0 : i32, i32
  }
}

</mosaic_0001>

<bundles_post_ra>
// kernel: tpu_custom_call.1
= control target key start
LH: loop header
LB: loop body
LE: loop exit
PB: predicated region body
PF: predicated region fallthrough
CT: control target
= control target key end

     0   :  { %11 = vsyncpa [#allocation4], 0  ;;  %s1180_s0 = inlined_call_operand.vmem [shape: f32[8,128], index: 0, kind: input, shape index: {}]   ;;  %s1181_s1 = inlined_call_operand.hbm [shape: f32[8,128,128], index: 1, kind: input, shape index: {}]   ;;  %s1182_s2 = inlined_call_operand.vmem [shape: f32[8,1,128], index: 2, kind: input, shape index: {}]   ;;  %s1183_s3 = inlined_call_operand.vmem [shape: f32[8,1,128], index: 3, kind: input, shape index: {}]   ;;  %s1184_s4 = inlined_call_operand.vmem [shape: f32[128,32], index: 4, kind: input, shape index: {}]   ;;  %s1185_s5 = inlined_call_operand.vmem [shape: f32[1,32], index: 5, kind: input, shape index: {}]   ;;  %s1186_s6 = inlined_call_operand.hbm [shape: f32[8,32], index: 6, kind: output, shape index: {}]  }
   0x1   :  { %13 = vsyncpa [#allocation4 + $0x1], 0 }
   0x2   :  { %14 = vsyncpa [#allocation5], 0  ;;  %s958_s21 = smov 0   ;;  %s960_s22 = smov 0  }
   0x3   :  { %s962_s23 = smov 0   ;;  %s964_s24 = smov 0  }
   0x4 LB: > { %s977_s25 = sadd.s32 4294967295, %s911_s24   ;;  %s980_s26 = sadd.s32 1, %s911_s24   ;;  %s911_s24 = sphi %s964_s24, %s1193_s24   ;;  %s907_s23 = sphi %s962_s23, %s1192_s23   ;;  %s903_s22 = sphi %s960_s22, %s1191_s22   ;;  %s899_s21 = sphi %s958_s21, %s1190_s21  }
   0x5   : > { %s45_s27 = ssub.s32 %s911_s24, %s980_s26  ;;  %s48_s28 = sadd.s32 1, %s907_s23 }
   0x6   : > { %p46_p0 = scmp.eq.s32.totalorder %s45_s27, 0  ;;  %p55_p1 = scmp.ne.s32.totalorder %s907_s23, %s903_s22 }
   0x7   : > { %p56_p2 = scmp.eq.s32.totalorder %s911_s24, 0  ;;  %p61_p3 = scmp.ne.s32.totalorder %s903_s22, %s899_s21 }
   0x8   : > { %s990_s29 = scalar_select %p46_p0, %s907_s23, %s48_s28  }
   0x9   : > { %p57_p4 = por %p56_p2, %p55_p1  ;;  %p62_p5 = scmp.eq.s32.totalorder %s977_s25, 0 }
   0xa   : > { %p771_p6 = scmp.lt.s32.totalorder %s911_s24, 8  ;;  %s209_s7 = sand.u32 1, %s907_s23  }
   0xb   : > { %p994_p7 = por %p62_p5, %p61_p3  ;;  %s594_s8 = sshll.u32 %s209_s7, 7 }
   0xc   : > { %s608_s9 = sshll.u32 %s911_s24, 11  ;;  %s213_s13 = scalar_lea.vmem [#allocation3], %s594_s8 }
   0xd   : > { %s1003_s12 = scalar_lea.hbm %s1181_s1, %s608_s9  ;;  %s220_s14 = sshll.u32 %s213_s13, 4  ;;  %s1005_s14 = int_to_ptr.vmem [resolvable:$true] %s220_s14 }
   0xe   : > { %p1007_p8 = pnand %p771_p6, %p57_p4  ;;  %s1012_s16 = scalar_lea.sflag [#allocation4], %s209_s7 }
   0xf   : > { %s817_s17 = scalar_lea.hbm %s1003_s12, 2048  ;;  %s822_s20 = scalar_lea.hbm %s1181_s1, 16384 }
  0x10   : > { %p818_p10 = scmp.ne.s32.totalorder %s1003_s12, %s817_s17  ;;  %p819_p11 = pneg %p1007_p8 }
  0x11   : > { %p823_p0 = scmp.lt.u32.totalorder %s1003_s12, %s1181_s1  ;;  %p824_p1 = scmp.lt.u32.totalorder %s822_s20, %s817_s17 }
  0x12   : > { %p820_p12 = pnand %p819_p11, %p818_p10  ;;  %p826_p3 = scmp.lt.u32.totalorder %s817_s17, %s1003_s12 }
  0x13   : > { %p825_p2 = por %p824_p1, %p823_p0 }
  0x14   : > { %p821_p13 = pneg %p820_p12 }
  0x15   : > { %p827_p4 = por %p826_p3, %p825_p2 }
  0x17   : > { %p828_p5 = pnand %p827_p4, %p821_p13 }
  0x19   : > { %831 = shalt.err (!%p828_p5)
}
  0x1a   : > { %s832_s28 = scalar_lea.vmem %s1005_s14, 2048  ;;  %s913_s7 = smov [#allocation3]  }
  0x1b   : > { %p833_p6 = scmp.ne.s32.totalorder %s1005_s14, %s832_s28  ;;  %s837_s8 = sshll.u32 %s913_s7, 4  ;;  %s838_s8 = int_to_ptr.vmem [resolvable:$false] %s837_s8 }
  0x1c   : > { %s839_s9 = scalar_lea.vmem %s838_s8, 4096  ;;  %p840_p9 = scmp.lt.s32.totalorder %s1005_s14, %s838_s8 }
  0x1d   : > { %p835_p10 = pnand %p833_p6, %p819_p11  ;;  %p841_p0 = scmp.lt.s32.totalorder %s839_s9, %s832_s28 }
  0x1f   : > { %p836_p12 = pneg %p835_p10  ;;  %p842_p1 = por %p841_p0, %p840_p9 }
  0x21   : > { %p843_p2 = pnand %p842_p1, %p836_p12 }
  0x23   : > { %846 = shalt.err (!%p843_p2)
}
  0x24   : > { %s914_s10 = smov 128   ;;  %s915_s11 = smov 8  }
  0x25   : > { %770 = dma.hbm_to_vmem [thread:$0]  (!%p1007_p8), %s1003_s12, 2048, %s1005_s14, %s1012_s16, %s914_s10, %s914_s10, %s915_s11  }
  0x26   : > { %p240_p11 = scmp.lt.s32.totalorder %s911_s24, 9  ;;  %p1189_p13 = scmp.ge.s32.totalorder %s911_s24, 1 }
  0x28   : > { %p241_p3 = pnand %p1189_p13, %p240_p11 }
  0x29   : > { %s246_s13 = sand.u32 (!%p241_p3), 1, %s903_s22  }
  0x2a   : > { %244 = sbr.rel (%p241_p3) target bundleno = 599 (0x257), region = 44  ;;  %s598_s17 = sshll.u32 (!%p241_p3), %s246_s13, 7 }
  0x2b   : > { %s247_s18 = scalar_lea.sflag (!%p241_p3), [#allocation4], %s246_s13  ;;  %s1044_s19 = scalar_lea.vmem (!%p241_p3), [#allocation3], %s598_s17 }
  0x31   : > { %890 = dma.done.wait (%p994_p7), %s247_s18, 2048  }
  0x32   : > { %892 = vsyncadd (%p994_p7), %s247_s18, 4294965248  ;;  %p280_p9 = scmp.lt.s32.totalorder %s977_s25, 7  ;;  %p599_p8 = scmp.ne.s32.totalorder %s977_s25, 0 }
  0x33   : > { %v290_v0 = vld [vmem:[%s1180_s0] sm:$0xff] (!%p599_p8) }
  0x34   : > { %s1052_s12 = scalar_select %p280_p9, %s977_s25, 7 }
  0x35   : > { %289 = sbr.rel (%p599_p8) target bundleno = 60 (0x3c), region = 52  ;;  %291 = vst [vmem:[#allocation2] sm:$0xff] (!%p599_p8), %v290_v0 }
  0x36   : > { %s282_s15 = scalar_lea.vmem %s1182_s2, %s1052_s12  ;;  %s285_s21 = scalar_lea.vmem %s1183_s3, %s1052_s12 }
  0x3c PF: > { %v293_v1 = vld [vmem:[%s1044_s19] sm:$0xff]  ;;  %v294_v2 = vld [vmem:[%s1044_s19 + $0x8] sm:$0xff]  ;;  %v295_v3 = vld [vmem:[%s1044_s19 + $0x10] sm:$0xff]  ;;  %v916_v4 = vmov 0.0|0.0   ;;  %vm917_vm0 = vmmov 0   ;;  %v918_v7 = vmov 0.0  }
  0x3d   : > { %713 = vmatprep.subr.bf16.mxu0 %v916_v4  ;;  %v714_v5 = vpack.c.bf16 %v294_v2, %v293_v1  ;;  %v296_v6 = vld [vmem:[%s1044_s19 + $0x18] sm:$0xff]  ;;  %675 = vmatprep.mubr.msk.f32.mxu0 %vm917_vm0, %v918_v7  ;;  %v297_v9 = vld [vmem:[%s1044_s19 + $0x20] sm:$0xff]  ;;  %v298_v10 = vld [vmem:[%s1044_s19 + $0x28] sm:$0xff]  ;;  %p602_p7 = scmp.ne.s32.totalorder %s977_s25, 7 }
  0x3e   : > { %v717_v8 = vpack.c.bf16 %v296_v6, %v295_v3  ;;  %v720_v11 = vpack.c.bf16 %v298_v10, %v297_v9  ;;  %v299_v12 = vld [vmem:[%s1044_s19 + $0x30] sm:$0xff]  ;;  %v300_v13 = vld [vmem:[%s1044_s19 + $0x38] sm:$0xff]  ;;  %v301_v15 = vld [vmem:[%s1044_s19 + $0x40] sm:$0xff]  ;;  %v919_v57 = vmov (!%p602_p7), 0.0|0.0   ;;  %vm920_vm1 = vmmov (!%p602_p7), 0  }
  0x3f   : > { %715 = vmatpush3.bf16.msra.mxu0 %v714_v5  ;;  %v723_v14 = vpack.c.bf16 %v300_v13, %v299_v12  ;;  %v302_v16 = vld [vmem:[%s1044_s19 + $0x48] sm:$0xff]  ;;  %v303_v18 = vld [vmem:[%s1044_s19 + $0x50] sm:$0xff]  ;;  %v304_v19 = vld [vmem:[%s1044_s19 + $0x58] sm:$0xff]  ;;  %v921_v60 = vmov (!%p602_p7), 0.0   ;;  %vm514_vm2 = vcmask (!%p602_p7), 261120  }
  0x40   : > { %716 = vmatprep.subr.bf16.mxu0 %v916_v4  ;;  %v726_v17 = vpack.c.bf16 %v302_v16, %v301_v15  ;;  %v729_v20 = vpack.c.bf16 %v304_v19, %v303_v18  ;;  %v305_v21 = vld [vmem:[%s1044_s19 + $0x60] sm:$0xff]  ;;  %v306_v22 = vld [vmem:[%s1044_s19 + $0x68] sm:$0xff]  ;;  %v307_v24 = vld [vmem:[%s1044_s19 + $0x70] sm:$0xff] }
  0x41   : > { %v732_v23 = vpack.c.bf16 %v306_v22, %v305_v21  ;;  %v308_v25 = vld [vmem:[%s1044_s19 + $0x78] sm:$0xff]  ;;  %v422_v55 = vld [vmem:[%s1184_s4 + $0x8] sm:$0xff] (!%p602_p7)  ;;  %v423_v56 = vld [vmem:[%s1184_s4 + $0x10] sm:$0xff] (!%p602_p7) }
  0x42   : > { %v735_v26 = vpack.c.bf16 %v308_v25, %v307_v24  ;;  %v292_v27 = vld [vmem:[#allocation2] sm:$0xff]  ;;  %v424_v59 = vld [vmem:[%s1184_s4 + $0x18] sm:$0xff] (!%p602_p7)  ;;  %v426_v63 = vld [vmem:[%s1184_s4 + $0x28] sm:$0xff] (!%p602_p7) }
  0x43   : > { %718 = vmatpush3.bf16.msra.mxu0 %v717_v8  ;;  %v600_v48 = vld [vmem:[%s282_s15] ss:$0 sm:$0xff]  ;;  %v741_v61 = vpack.c.bf16 (!%p602_p7), %v424_v59, %v423_v56  ;;  %v427_v1 = vld [vmem:[%s1184_s4 + $0x30] sm:$0xff] (!%p602_p7)  ;;  %v428_v2 = vld [vmem:[%s1184_s4 + $0x38] sm:$0xff] (!%p602_p7) }
  0x44   : > { %719 = vmatprep.subr.bf16.mxu0 %v916_v4  ;;  %v601_v50 = vld [vmem:[%s285_s21] ss:$0 sm:$0xff]  ;;  %v747_v3 = vpack.c.bf16 (!%p602_p7), %v428_v2, %v427_v1  ;;  %v430_v5 = vld [vmem:[%s1184_s4 + $0x48] sm:$0xff] (!%p602_p7)  ;;  %v431_v7 = vld [vmem:[%s1184_s4 + $0x50] sm:$0xff] (!%p602_p7) }
  0x45   : > { %v421_v54 = vld [vmem:[%s1184_s4] sm:$0xff] (!%p602_p7)  ;;  %v432_v8 = vld [vmem:[%s1184_s4 + $0x58] sm:$0xff] (!%p602_p7)  ;;  %v435_v13 = vld [vmem:[%s1184_s4 + $0x70] sm:$0xff] (!%p602_p7) }
  0x46   : > { %v738_v58 = vpack.c.bf16 (!%p602_p7), %v422_v55, %v421_v54  ;;  %v425_v62 = vld [vmem:[%s1184_s4 + $0x20] sm:$0xff] (!%p602_p7)  ;;  %v753_v9 = vpack.c.bf16 (!%p602_p7), %v432_v8, %v431_v7 }
  0x47   : > { %721 = vmatpush3.bf16.msra.mxu0 %v720_v11  ;;  %v744_v0 = vpack.c.bf16 (!%p602_p7), %v426_v63, %v425_v62  ;;  %v433_v10 = vld [vmem:[%s1184_s4 + $0x60] sm:$0xff] (!%p602_p7)  ;;  %v434_v11 = vld [vmem:[%s1184_s4 + $0x68] sm:$0xff] (!%p602_p7) }
  0x48   : > { %722 = vmatprep.subr.bf16.mxu0 %v916_v4  ;;  %v756_v12 = vpack.c.bf16 (!%p602_p7), %v434_v11, %v433_v10  ;;  %v603_v16 = vld [vmem:[%s1185_s5] ss:$0 sm:$0xff] (!%p602_p7) }
  0x4b   : > { %724 = vmatpush3.bf16.msra.mxu0 %v723_v14  ;;  %v436_v14 = vld [vmem:[%s1184_s4 + $0x78] sm:$0xff] (!%p602_p7) }
  0x4c   : > { %725 = vmatprep.subr.bf16.mxu0 %v916_v4  ;;  %v759_v15 = vpack.c.bf16 (!%p602_p7), %v436_v14, %v435_v13 }
  0x4f   : > { %727 = vmatpush3.bf16.msra.mxu0 %v726_v17 }
  0x50   : > { %728 = vmatprep.subr.bf16.mxu0 %v916_v4 }
  0x53   : > { %730 = vmatpush3.bf16.msra.mxu0 %v729_v20 }
  0x54   : > { %731 = vmatprep.subr.bf16.mxu0 %v916_v4 }
  0x57   : > { %733 = vmatpush3.bf16.msra.mxu0 %v732_v23 }
  0x58   : > { %734 = vmatprep.subr.bf16.mxu0 %v916_v4  ;;  %v429_v4 = vld [vmem:[%s1184_s4 + $0x40] sm:$0xff] (!%p602_p7) }
  0x59   : > { %v750_v6 = vpack.c.bf16 (!%p602_p7), %v430_v5, %v429_v4 }
  0x5b   : > { %736 = vmatpush3.bf16.msra.mxu0 %v735_v26 }
  0x5c   : > { %737 = vmatprep.subr.bf16.mxu0 (!%p602_p7), %v919_v57 }
  0x5e   : > { %676 = vmatmul.mubr.f32.vlgmr.msra.gmra.mrb[0].mxu0 %v292_v27 }
  0x5f   : > { %710 = vmatprep.mubr.msk.f32.mxu0 (!%p602_p7), %vm920_vm1, %v921_v60  ;;  %739 = vmatpush3.bf16.msra.mxu0 (!%p602_p7), %v738_v58 }
  0x60   : > { %740 = vmatprep.subr.bf16.mxu0 (!%p602_p7), %v919_v57 }
  0x63   : > { %742 = vmatpush3.bf16.msra.mxu0 (!%p602_p7), %v741_v61 }
  0x64   : > { %743 = vmatprep.subr.bf16.mxu0 (!%p602_p7), %v919_v57 }
  0x67   : > { %745 = vmatpush3.bf16.msra.mxu0 (!%p602_p7), %v744_v0 }
  0x68   : > { %746 = vmatprep.subr.bf16.mxu0 (!%p602_p7), %v919_v57 }
  0x6b   : > { %748 = vmatpush3.bf16.msra.mxu0 (!%p602_p7), %v747_v3 }
  0x6c   : > { %749 = vmatprep.subr.bf16.mxu0 (!%p602_p7), %v919_v57 }
  0x6f   : > { %751 = vmatpush3.bf16.msra.mxu0 (!%p602_p7), %v750_v6 }
  0x70   : > { %752 = vmatprep.subr.bf16.mxu0 (!%p602_p7), %v919_v57 }
  0x73   : > { %754 = vmatpush3.bf16.msra.mxu0 (!%p602_p7), %v753_v9 }
  0x74   : > { %755 = vmatprep.subr.bf16.mxu0 (!%p602_p7), %v919_v57 }
  0x77   : > { %757 = vmatpush3.bf16.msra.mxu0 (!%p602_p7), %v756_v12 }
  0x78   : > { %758 = vmatprep.subr.bf16.mxu0 (!%p602_p7), %v919_v57 }
  0x7b   : > { %760 = vmatpush3.bf16.msra.mxu0 (!%p602_p7), %v759_v15 }
 0x131   : > { %v375_v28 = vpop.f32.mrb[0].mxu0 }
 0x132   : > { %v379_v29 = vrot.slane %v375_v28, 4  ;;  %v677_v30 = vpop.f32.mrb[1].mxu0 }
 0x134   : > { %v380_v31 = vadd.f32 %v379_v29, %v375_v28 }
 0x136   : > { %v381_v32 = vrot.slane %v380_v31, 2 }
 0x138   : > { %v382_v33 = vadd.f32 %v381_v32, %v380_v31 }
 0x13a   : > { %v383_v34 = vrot.slane %v382_v33, 1 }
 0x13c   : > { %v384_v35 = vadd.f32 %v383_v34, %v382_v33 }
 0x13e   : > { %v386_v36 = vmul.f32 0.125, %v384_v35 }
 0x140   : > { %v387_v37 = vsub.f32 %v375_v28, %v386_v36 }
 0x142   : > { %v388_v38 = vmul.f32 %v387_v37, %v387_v37 }
 0x144   : > { %v389_v39 = vrot.slane %v388_v38, 4 }
 0x146   : > { %v390_v40 = vadd.f32 %v389_v39, %v388_v38 }
 0x148   : > { %v391_v41 = vrot.slane %v390_v40, 2 }
 0x14a   : > { %v392_v42 = vadd.f32 %v391_v41, %v390_v40 }
 0x14c   : > { %v393_v43 = vrot.slane %v392_v42, 1 }
 0x14e   : > { %v394_v44 = vadd.f32 %v393_v43, %v392_v42 }
 0x150   : > { %v395_v45 = vmul.f32 0.125, %v394_v44 }
 0x152   : > { %v396_v46 = vadd.f32 1e-05, %v395_v45 }
 0x154   : > { %815 = vrsqrt.f32 %v396_v46 }
 0x15e   : > { %v816_v47 = vpop.eup %815 }
 0x15f   : > { %v398_v49 = vmul.f32 %v816_v47, %v387_v37 }
 0x161   : > { %v406_v51 = vmul.f32 %v600_v48, %v398_v49  ;;  %420 = sbr.rel (%p602_p7) target bundleno = 574 (0x23e), region = 56 }
 0x163   : > { %v414_v52 = vadd.f32 %v601_v50, %v406_v51 }
 0x165   : > { %v415_v53 = vmax.f32 %v414_v52, 0.0 }
 0x167   : > { %416 = vst [vmem:[#allocation2] sm:$0xff] %v415_v53  ;;  %711 = vmatmul.mubr.f32.vlgmr.msra.gmra.mrb[0].mxu0 (!%p602_p7), %v415_v53 }
 0x23a   : > { %v510_v17 = vpop.f32.mrb[0].mxu0 }
 0x23b   : > { %v511_v18 = vadd.f32 %v603_v16, %v510_v17  ;;  %v712_v19 = vpop.f32.mrb[1].mxu0 }
 0x23d   : > { %515 = vst.msk [vmem:[#allocation6] sm:$0xff] %vm514_vm2, %v511_v18 }
 0x23e PF: > { %p772_p4 = scmp.eq.s32.totalorder %s977_s25, 7  ;;  %s922_s28 = smov [#allocation6]  }
 0x23f   : > { %s523_s7 = sshll.u32 %s922_s28, 4  ;;  %s524_s7 = int_to_ptr.vmem [resolvable:$true] %s523_s7 }
 0x240   : > { %s847_s8 = scalar_lea.vmem %s524_s7, 128  ;;  %p854_p12 = scmp.lt.s32.totalorder %s524_s7, %s524_s7 }
 0x241   : > { %p848_p5 = scmp.ne.s32.totalorder %s524_s7, %s847_s8  ;;  %p855_p0 = scmp.lt.s32.totalorder %s847_s8, %s847_s8 }
 0x243   : > { %p849_p6 = pnand %p848_p5, %p772_p4  ;;  %p856_p1 = por %p855_p0, %p854_p12 }
 0x245   : > { %p850_p10 = pneg %p849_p6 }
 0x247   : > { %p857_p2 = pnand %p856_p1, %p850_p10 }
 0x249   : > { %860 = shalt.err (!%p857_p2)
}
 0x24a   : > { %s861_s11 = scalar_lea.hbm %s1186_s6, 128 }
 0x24b   : > { %p862_p11 = scmp.ne.s32.totalorder %s1186_s6, %s861_s11  ;;  %p867_p9 = scmp.lt.u32.totalorder %s861_s11, %s1186_s6 }
 0x24d   : > { %p863_p13 = pnand %p862_p11, %p772_p4 }
 0x24f   : > { %p864_p3 = pneg %p863_p13 }
 0x251   : > { %p869_p8 = pnand %p867_p9, %p864_p3 }
 0x253   : > { %872 = shalt.err (!%p869_p8)
}
 0x254   : > { %764 = dma.vmem_to_hbm [thread:$0]  (%p772_p4), %s524_s7, 128, %s1186_s6, [#allocation5]  }
 0x255   : > { %894 = dma.done.wait (%p772_p4), [#allocation5], 128  }
 0x256   : > { %896 = vsyncadd (%p772_p4), [#allocation5], 4294967168 }
 0x257 PF: > { %p17_p7 = scmp.ge.s32.totalorder %s980_s26, 10   ;;  %s1190_s21 = smov %s903_s22 }
 0x258   : > { %s1191_s22 = smov %s907_s23  ;;  %s1192_s23 = smov %s990_s29 }
 0x259   : > { %s1193_s24 = smov %s980_s26  ;;  %19 = sbr.rel (!%p17_p7) target bundleno = 4 (0x4), region = 95 }
 0x260   :  { %536 = vsyncpa [#allocation4], 1 }
 0x261   :  { %538 = vsyncpa [#allocation4 + $0x1], 1 }
 0x262   :  { %539 = vsyncpa [#allocation5], 1 }
 0x263   :  { %541 = vsyncpa [#allocation5 + $0x1], 1 }

</bundles_post_ra>
